<compile_context>
chip_gen: v7x
topology: tpu7x:2x2x1
jax: 0.10.0
libtpu: 0.0.40
codegen_flags: <defaults>
</compile_context>

<pallas_src>
import jax
import jax.numpy as jnp
from jax.experimental import pallas as pl
from jax.experimental.pallas import tpu as pltpu


def _attn_kernel(q_ref, k_ref, v_ref, factor_ref, scale_ref, o_ref):
    """One grid step processes TB batches.

    q_ref      : (TB, L, D)    matmul dtype
    k_ref      : (TB, S, D)
    v_ref      : (TB, S, D)
    factor_ref : (TB, FL, S)   key_mask (FL=1) or key_mask*keep/(1-p) (FL=L)
    scale_ref  : (TB, 1, 1)    per-batch scale
    o_ref      : (TB, 1, L*D)  lane-dense output slab
    """
    q = q_ref[...]
    k = k_ref[...]
    v = v_ref[...]
    factor = factor_ref[...].astype(jnp.float32)        # (TB, FL, S)
    scale = scale_ref[...].astype(jnp.float32)          # (TB, 1, 1)

    # Scores: contract the feature dim directly (no explicit transpose);
    # MXU accumulates in f32; per-batch scale applied exactly in f32.
    qk = jnp.einsum("bld,bsd->bls", q, k,
                    preferred_element_type=jnp.float32)  # (TB, L, S)
    qk = qk * scale

    # Numerically-stable softmax along the last axis (matches torch.softmax).
    qk_max = jnp.max(qk, axis=-1, keepdims=True)
    e = jnp.exp(qk - qk_max)
    denom = jnp.sum(e, axis=-1, keepdims=True)
    soft = e * pl.reciprocal(denom, approx=True)         # EUP reciprocal

    # key_mask * dropout-keep-mask * 1/(1-p) fused into one factor.
    dropped = soft * factor

    out = jnp.einsum("bls,bsd->bld", dropped.astype(v.dtype), v,
                     preferred_element_type=jnp.float32)  # (TB, L, D)
    tb = out.shape[0]
    # Lane-dense store: last dim L*D (>=128 for typical D) -> unmasked vst.
    o_ref[...] = out.reshape(tb, 1, -1).astype(o_ref.dtype)


def _pad(n, m):
    return ((n + m - 1) // m) * m


def _vmem_caps():
    """(working-set budget, scoped-VMEM limit) in bytes, generation-aware."""
    try:
        info = pltpu.get_tpu_info()
        cap = int(getattr(info, "vmem_capacity_bytes", 64 << 20))
    except Exception:  # not on a TPU (e.g. interpret mode) -> conservative
        cap = 64 << 20
    budget = max(8 << 20, int(cap * 0.45))   # ~57 MiB on v5e/v6e, ~28 MiB on v7x
    limit = min(int(cap * 0.8), 112 << 20)   # explicit limit (v5e default is 16 MiB)
    return budget, limit


def _pick_tb(B, L, S, D, in_itemsize, FL, budget_bytes):
    """Largest batch-tile TB dividing B whose padded working set fits the budget."""
    Lr, Sr, Fr = _pad(L, 8), _pad(S, 8), _pad(FL, 8)
    Dc, Sc = _pad(D, 128), _pad(S, 128)
    # Inputs/outputs are double-buffered by the BlockSpec pipeline; each
    # (rows, cols) slice is physically stored as padded (8, 128) tiles.
    io = 2 * ((Lr * Dc + 2 * Sr * Dc) * in_itemsize     # q, k, v
              + Fr * Sc * 4                             # mask/keep factor (f32)
              + Lr * Dc * in_itemsize)                  # output slab
    inter = 6 * Lr * Sc * 4                             # f32 (L, S) temporaries
    per_batch = io + inter + 8192                       # scale tile + slack
    tb = max(1, min(B, budget_bytes // max(per_batch, 1)))
    if B >= 2:
        tb = min(tb, B // 2)   # keep >=2 grid steps so both v7x TCs get work
    while B % tb:
        tb -= 1
    return tb


def sdpa_pallas(query_input, key_input, value_input, query_mask, key_mask,
                scale_factor, dropout_p, *, seed=0, matmul_dtype=None):
    # query_mask is accepted (PyTorch signature) but unused by the forward.
    del query_mask
    B, L, D = query_input.shape
    _, S, _ = key_input.shape
    out_dtype = query_input.dtype
    p = float(dropout_p)

    # F.dropout(p=1) zeros everything: skip the kernel entirely (pure memset,
    # no HBM reads).  NB: PyTorch raises for p > 1; here any p >= 1 -> zeros.
    if p >= 1.0:
        return jnp.zeros((B, L, D), dtype=out_dtype)

    if matmul_dtype is not None:
        # Optional low-precision matmul operands (e.g. bf16) for f32 callers:
        # halves HBM/VMEM traffic; accumulation and softmax math stay f32.
        query_input = query_input.astype(matmul_dtype)
        key_input = key_input.astype(matmul_dtype)
        value_input = value_input.astype(matmul_dtype)

    # key_mask * dropout-keep * 1/(1-p) folded into a single f32 factor.
    key_mask_f = key_mask.astype(jnp.float32)                      # (B, 1, S)
    if p > 0.0:
        # TODO(synk): PyTorch's dropout RNG stream cannot be reproduced
        # bit-exactly; an in-kernel pltpu.prng_* path would avoid this HBM
        # traffic but has no interpret-mode lowering, so the keep-mask is
        # generated here with jax.random.
        keep = jax.random.bernoulli(jax.random.PRNGKey(seed), 1.0 - p, (B, L, S))
        factor = key_mask_f * keep.astype(jnp.float32) * jnp.float32(1.0 / (1.0 - p))
    else:
        factor = key_mask_f
    FL = factor.shape[1]

    scale = scale_factor.astype(jnp.float32)                       # (B, 1, 1)

    budget, vmem_limit = _vmem_caps()
    tb = _pick_tb(B, L, S, D, jnp.dtype(query_input.dtype).itemsize, FL, budget)

    grid_spec = pltpu.PrefetchScalarGridSpec(
        num_scalar_prefetch=0,
        grid=(B // tb,),
        in_specs=[
            pl.BlockSpec((tb, L, D), lambda b: (b, 0, 0)),     # query
            pl.BlockSpec((tb, S, D), lambda b: (b, 0, 0)),     # key
            pl.BlockSpec((tb, S, D), lambda b: (b, 0, 0)),     # value
            pl.BlockSpec((tb, FL, S), lambda b: (b, 0, 0)),    # mask/keep factor
            pl.BlockSpec((tb, 1, 1), lambda b: (b, 0, 0)),     # scale
        ],
        out_specs=pl.BlockSpec((tb, 1, L * D), lambda b: (b, 0, 0)),
    )

    out_flat = pl.pallas_call(
        _attn_kernel,
        out_shape=jax.ShapeDtypeStruct((B, 1, L * D), out_dtype),
        grid_spec=grid_spec,
        compiler_params=pltpu.CompilerParams(
            dimension_semantics=("parallel",),    # batches independent -> megacore
            vmem_limit_bytes=vmem_limit),
    )(query_input, key_input, value_input, factor, scale)

    return out_flat.reshape(B, L, D)


if __name__ == "__main__":
    # Small shapes consistent with the module's forward semantics.
    B, L, S, D = 2, 8, 16, 32
    dropout_p = 1.0   # module global `dropout = 1` (p=1 -> all-zero output)

    key = jax.random.PRNGKey(0)
    kq, kk, kv, km, ks = jax.random.split(key, 5)

    query_input = jax.random.normal(kq, (B, L, D), dtype=jnp.float32)
    key_input = jax.random.normal(kk, (B, S, D), dtype=jnp.float32)
    value_input = jax.random.normal(kv, (B, S, D), dtype=jnp.float32)
    query_mask = jnp.ones((B, 1, L), dtype=jnp.float32)       # unused by forward
    key_mask = (jax.random.uniform(km, (B, 1, S)) > 0.2).astype(jnp.float32)
    scale_factor = jax.random.normal(ks, (B, 1, 1), dtype=jnp.float32)

    # p = 1 path (module's global dropout=1): wrapper short-circuit, all zeros.
    out_p1 = sdpa_pallas(query_input, key_input, value_input, query_mask,
                         key_mask, scale_factor, dropout_p)
    jax.block_until_ready(out_p1)
    assert out_p1.shape == (B, L, D)
    assert bool(jnp.all(out_p1 == 0.0))

    # p = 0 path exercises the full matmul/softmax/mask pipeline; check against
    # a pure-JAX reference (loose tolerance for the EUP approx reciprocal).
    out_p0 = sdpa_pallas(query_input, key_input, value_input, query_mask,
                         key_mask, scale_factor, 0.0)
    jax.block_until_ready(out_p0)
    hp = jax.lax.Precision.HIGHEST
    qk_ref = jnp.einsum("bld,bsd->bls", query_input, key_input,
                        precision=hp) * scale_factor
    ref = jnp.einsum("bls,bsd->bld",
                     jax.nn.softmax(qk_ref, axis=-1) * key_mask,
                     value_input, precision=hp)
    assert bool(jnp.allclose(out_p0, ref, rtol=5e-2, atol=5e-2))

    # 0 < p < 1 path exercises the fused dropout/mask factor branch.
    out_p5 = sdpa_pallas(query_input, key_input, value_input, query_mask,
                         key_mask, scale_factor, 0.5, seed=123)
    jax.block_until_ready(out_p5)
    assert out_p5.shape == (B, L, D)
    assert bool(jnp.all(jnp.isfinite(out_p5)))

    print("KERNEL_OK")
</pallas_src>

<mosaic_0001>
module attributes {stable_mosaic.version = 11 : i64} {
  func.func @_attn_kernel(%arg0: i32, %arg1: memref<1x8x32xf32, #tpu.memory_space<vmem>>, %arg2: memref<1x16x32xf32, #tpu.memory_space<vmem>>, %arg3: memref<1x16x32xf32, #tpu.memory_space<vmem>>, %arg4: memref<1x1x16xf32, #tpu.memory_space<vmem>>, %arg5: memref<1x1x1xf32, #tpu.memory_space<vmem>>, %arg6: memref<1x1x256xf32, #tpu.memory_space<vmem>>) attributes {dimension_semantics = [#tpu.dimension_semantics<parallel>], iteration_bounds = array<i64: 2>, scalar_prefetch = 0 : i64, scratch_operands = 0 : i64, tpu.core_type = #tpu.core_type<tc>, window_params = [{transform_indices = @transform_0, window_bounds = array<i64: 1, 8, 32>}, {transform_indices = @transform_1, window_bounds = array<i64: 1, 16, 32>}, {transform_indices = @transform_2, window_bounds = array<i64: 1, 16, 32>}, {transform_indices = @transform_3, window_bounds = array<i64: 1, 1, 16>}, {transform_indices = @transform_4, window_bounds = array<i64: 1, 1, 1>}, {transform_indices = @transform_5, window_bounds = array<i64: 1, 1, 256>}]} {
    %c0 = arith.constant 0 : index
    %c0_0 = arith.constant 0 : index
    %c0_1 = arith.constant 0 : index
    %0 = vector.load %arg1[%c0, %c0_0, %c0_1] : memref<1x8x32xf32, #tpu.memory_space<vmem>>, vector<1x8x32xf32>
    %c0_2 = arith.constant 0 : index
    %c0_3 = arith.constant 0 : index
    %c0_4 = arith.constant 0 : index
    %1 = vector.load %arg2[%c0_2, %c0_3, %c0_4] : memref<1x16x32xf32, #tpu.memory_space<vmem>>, vector<1x16x32xf32>
    %c0_5 = arith.constant 0 : index
    %c0_6 = arith.constant 0 : index
    %c0_7 = arith.constant 0 : index
    %2 = vector.load %arg3[%c0_5, %c0_6, %c0_7] : memref<1x16x32xf32, #tpu.memory_space<vmem>>, vector<1x16x32xf32>
    %c0_8 = arith.constant 0 : index
    %c0_9 = arith.constant 0 : index
    %c0_10 = arith.constant 0 : index
    %3 = vector.load %arg4[%c0_8, %c0_9, %c0_10] : memref<1x1x16xf32, #tpu.memory_space<vmem>>, vector<1x1x16xf32>
    %c0_11 = arith.constant 0 : index
    %c0_12 = arith.constant 0 : index
    %c0_13 = arith.constant 0 : index
    %4 = vector.load %arg5[%c0_11, %c0_12, %c0_13] : memref<1x1x1xf32, #tpu.memory_space<vmem>>, vector<1x1x1xf32>
    "tpu.trace_start"() <{level = 10 : i32, message = "bld,bsd->bls"}> : () -> ()
    %cst = arith.constant dense<0.000000e+00> : vector<1x8x16xf32>
    %5 = tpu.matmul %0, %1, %cst {dimension_numbers = #tpu.dot_dimension_numbers<[2], [2], [1], [1], [0, 0, 0, 1, 1, 1], [0], [0]>} : vector<1x8x32xf32>, vector<1x16x32xf32>, vector<1x8x16xf32> -> vector<1x8x16xf32>
    "tpu.trace_stop"() : () -> ()
    %6 = vector.broadcast %4 : vector<1x1x1xf32> to vector<1x8x16xf32>
    %7 = arith.mulf %5, %6 : vector<1x8x16xf32>
    %cst_14 = arith.constant dense<0xFF800000> : vector<1x8xf32>
    %8 = vector.multi_reduction <maximumf>, %7, %cst_14 [2] : vector<1x8x16xf32> to vector<1x8xf32>
    %9 = vector.shape_cast %8 : vector<1x8xf32> to vector<1x8x1xf32>
    %10 = vector.broadcast %9 : vector<1x8x1xf32> to vector<1x8x16xf32>
    %11 = arith.subf %7, %10 : vector<1x8x16xf32>
    %12 = math.exp %11 : vector<1x8x16xf32>
    %cst_15 = arith.constant dense<0.000000e+00> : vector<1x8xf32>
    %13 = vector.multi_reduction <add>, %12, %cst_15 [2] : vector<1x8x16xf32> to vector<1x8xf32>
    %14 = vector.shape_cast %13 : vector<1x8xf32> to vector<1x8x1xf32>
    %15 = tpu.reciprocal %14 {approx = true} : vector<1x8x1xf32> -> vector<1x8x1xf32>
    %16 = vector.broadcast %15 : vector<1x8x1xf32> to vector<1x8x16xf32>
    %17 = arith.mulf %12, %16 : vector<1x8x16xf32>
    %18 = vector.broadcast %3 : vector<1x1x16xf32> to vector<1x8x16xf32>
    %19 = arith.mulf %17, %18 : vector<1x8x16xf32>
    "tpu.trace_start"() <{level = 10 : i32, message = "bls,bsd->bld"}> : () -> ()
    %cst_16 = arith.constant dense<0.000000e+00> : vector<1x8x32xf32>
    %20 = tpu.matmul %19, %2, %cst_16 {dimension_numbers = #tpu.dot_dimension_numbers<[2], [1], [1], [2], [0, 0, 0, 1, 1, 2], [0], [0]>} : vector<1x8x16xf32>, vector<1x16x32xf32>, vector<1x8x32xf32> -> vector<1x8x32xf32>
    "tpu.trace_stop"() : () -> ()
    %21 = vector.shape_cast %20 : vector<1x8x32xf32> to vector<1x1x256xf32>
    %c0_17 = arith.constant 0 : index
    %c0_18 = arith.constant 0 : index
    %c0_19 = arith.constant 0 : index
    %22 = vector.load %arg6[%c0_17, %c0_18, %c0_19] : memref<1x1x256xf32, #tpu.memory_space<vmem>>, vector<1x1x256xf32>
    tpu.vector_store %arg6[%c0_17, %c0_18, %c0_19], %21 {strides = array<i32>} : memref<1x1x256xf32, #tpu.memory_space<vmem>>, vector<1x1x256xf32>,
    return
  }
  func.func @transform_0(%arg0: i32) -> (i32, i32, i32) {
    %c0_i32 = arith.constant 0 : i32
    %c0_i32_0 = arith.constant 0 : i32
    %c0_i32_1 = arith.constant 0 : i32
    return %arg0, %c0_i32, %c0_i32_0 : i32, i32, i32
  }
  func.func @transform_1(%arg0: i32) -> (i32, i32, i32) {
    %c0_i32 = arith.constant 0 : i32
    %c0_i32_0 = arith.constant 0 : i32
    %c0_i32_1 = arith.constant 0 : i32
    return %arg0, %c0_i32, %c0_i32_0 : i32, i32, i32
  }
  func.func @transform_2(%arg0: i32) -> (i32, i32, i32) {
    %c0_i32 = arith.constant 0 : i32
    %c0_i32_0 = arith.constant 0 : i32
    %c0_i32_1 = arith.constant 0 : i32
    return %arg0, %c0_i32, %c0_i32_0 : i32, i32, i32
  }
  func.func @transform_3(%arg0: i32) -> (i32, i32, i32) {
    %c0_i32 = arith.constant 0 : i32
    %c0_i32_0 = arith.constant 0 : i32
    %c0_i32_1 = arith.constant 0 : i32
    return %arg0, %c0_i32, %c0_i32_0 : i32, i32, i32
  }
  func.func @transform_4(%arg0: i32) -> (i32, i32, i32) {
    %c0_i32 = arith.constant 0 : i32
    %c0_i32_0 = arith.constant 0 : i32
    %c0_i32_1 = arith.constant 0 : i32
    return %arg0, %c0_i32, %c0_i32_0 : i32, i32, i32
  }
  func.func @transform_5(%arg0: i32) -> (i32, i32, i32) {
    %c0_i32 = arith.constant 0 : i32
    %c0_i32_0 = arith.constant 0 : i32
    %c0_i32_1 = arith.constant 0 : i32
    return %arg0, %c0_i32, %c0_i32_0 : i32, i32, i32
  }
}

</mosaic_0001>

<bundles_post_ra>
// kernel: tpu_custom_call.1
= control target key start
LH: loop header
LB: loop body
LE: loop exit
PB: predicated region body
PF: predicated region fallthrough
CT: control target
= control target key end

     0   :  { %s1396_s0 = inlined_call_operand.hbm [shape: f32[2,8,32], index: 0, kind: input, shape index: {}]   ;;  %s1397_s1 = inlined_call_operand.hbm [shape: f32[2,16,32], index: 1, kind: input, shape index: {}]   ;;  %s1398_s2 = inlined_call_operand.hbm [shape: f32[2,16,32], index: 2, kind: input, shape index: {}]   ;;  %s1399_s3 = inlined_call_operand.vmem [shape: f32[2,1,16], index: 3, kind: input, shape index: {}]   ;;  %s1400_s4 = inlined_call_operand.vmem [shape: f32[2,1,1], index: 4, kind: input, shape index: {}]   ;;  %s1401_s5 = inlined_call_operand.hbm [shape: f32[2,1,256], index: 5, kind: output, shape index: {}]  }
   0x1   :  { %1411 = sst [smem:[#allocation15_spill]] %s1397_s1 }
   0x2   :  { %10 = vsyncpa [#allocation3], 0 }
   0x3   :  { %12 = vsyncpa [#allocation3 + $0x1], 0 }
   0x4   :  { %13 = vsyncpa [#allocation6], 0 }
   0x5   :  { %15 = vsyncpa [#allocation6 + $0x1], 0 }
   0x6   :  { %16 = vsyncpa [#allocation4], 0 }
   0x7   :  { %18 = vsyncpa [#allocation4 + $0x1], 0  ;;  %s1122_s18 = smov 0   ;;  %s1124_s19 = smov 0  }
   0x8   :  { %s1126_s20 = smov 0   ;;  %s1128_s21 = smov 0  }
   0x9 LB: > { %1412 = sst [smem:[#allocation12_spill]] %s1070_s20  ;;  %s1143_s22 = sadd.s32 4294967295, %s1074_s21   ;;  %s1074_s21 = sphi %s1128_s21, %s1430_s21   ;;  %s1070_s20 = sphi %s1126_s20, %s1432_s20   ;;  %s1066_s19 = sphi %s1124_s19, %s1434_s19   ;;  %s1062_s18 = sphi %s1122_s18, %s1433_s18  }
   0xa   : > { %s784_s23 = sadd.s32 4294967294, %s1074_s21   ;;  %s1147_s24 = sadd.s32 1, %s1074_s21  }
   0xb   : > { %1413 = sst [smem:[#allocation13_spill]] %s1147_s24  ;;  %s31_s25 = sadd.s32 1, %s1070_s20 }
   0xc   : > { %s28_s26 = ssub.s32 %s1074_s21, %s1147_s24  ;;  %p38_p0 = scmp.ne.s32.totalorder %s1070_s20, %s1066_s19 }
   0xd   : > { %p29_p1 = scmp.eq.s32.totalorder %s28_s26, 0  ;;  %p39_p2 = scmp.eq.s32.totalorder %s1074_s21, 0 }
   0xe   : > { %p44_p3 = scmp.ne.s32.totalorder %s1066_s19, %s1062_s18  ;;  %p45_p4 = scmp.eq.s32.totalorder %s1143_s22, 0 }
   0xf   : > { %s1159_s27 = scalar_select %p29_p1, %s1070_s20, %s31_s25  }
  0x10   : > { %p40_p5 = por %p39_p2, %p38_p0  ;;  %p1161_p6 = por %p45_p4, %p44_p3 }
  0x11   : > { %1414 = sst [smem:[#allocation14_spill]] %s1159_s27  ;;  %p172_p7 = scmp.eq.s32.totalorder %s1143_s22, 1 }
  0x12   : > { %s1415_s28 = scalar_select %p1161_p6, 1, 0 }
  0x13   : > { %p178_p8 = scmp.eq.s32.totalorder %s784_s23, 1  ;;  %p863_p10 = scmp.lt.s32.totalorder %s1074_s21, 2 }
  0x14   : > { %p1168_p11 = por %p172_p7, %p38_p0  ;;  %s1177_s6 = sand.u32 1, %s1070_s20  }
  0x15   : > { %p1172_p12 = por %p178_p8, %p44_p3  ;;  %p1179_p13 = pnand %p863_p10, %p40_p5 }
  0x16   : > { %s1416_s29 = scalar_select %p1168_p11, 1, 0 }
  0x17   : > { %s1417_s30 = scalar_select %p1172_p12, 1, 0 }
  0x18   : > { %s1418_s7 = scalar_select %p1179_p13, 1, 0 }
  0x19   : > { %s216_s8 = sand.u32 1, %s1074_s21   ;;  %s789_s9 = sshll.u32 %s1177_s6, 4 }
  0x1a   : > { %s811_s10 = sshll.u32 %s1074_s21, 8  ;;  %s1419_s1 = sld [smem:[#allocation15_spill]] }
  0x1b   : > { %s220_s14 = scalar_lea.vmem [#allocation5], %s789_s9  ;;  %s1197_s16 = scalar_lea.sflag [#allocation6], %s216_s8 }
  0x1c   : > { %s227_s15 = sshll.u32 %s220_s14, 4  ;;  %p1203_p1 = pneg %p1179_p13  ;;  %s1195_s15 = int_to_ptr.vmem [resolvable:$true] %s227_s15 }
  0x20   : > { %s1191_s13 = scalar_lea.hbm %s1419_s1, %s811_s10  ;;  %s919_s11 = scalar_lea.hbm %s1419_s1, 512 }
  0x21   : > { %s914_s17 = scalar_lea.hbm %s1191_s13, 256  ;;  %p920_p4 = scmp.lt.u32.totalorder %s1191_s13, %s1419_s1 }
  0x22   : > { %p915_p0 = scmp.ne.s32.totalorder %s1191_s13, %s914_s17  ;;  %p921_p5 = scmp.lt.u32.totalorder %s919_s11, %s914_s17 }
  0x23   : > { %p923_p8 = scmp.lt.u32.totalorder %s914_s17, %s1191_s13 }
  0x24   : > { %p917_p2 = pnand %p1203_p1, %p915_p0  ;;  %p922_p7 = por %p921_p5, %p920_p4 }
  0x26   : > { %p918_p3 = pneg %p917_p2  ;;  %p924_p10 = por %p923_p8, %p922_p7 }
  0x28   : > { %p925_p9 = pnand %p924_p10, %p918_p3 }
  0x2a   : > { %928 = shalt.err (!%p925_p9)
}
  0x2b   : > { %s929_s8 = scalar_lea.vmem %s1195_s15, 256  ;;  %s1076_s25 = smov [#allocation5]  }
  0x2c   : > { %p930_p0 = scmp.ne.s32.totalorder %s1195_s15, %s929_s8  ;;  %s934_s26 = sshll.u32 %s1076_s25, 4  ;;  %s935_s26 = int_to_ptr.vmem [resolvable:$false] %s934_s26 }
  0x2d   : > { %s936_s12 = scalar_lea.vmem %s935_s26, 512  ;;  %p937_p11 = scmp.lt.s32.totalorder %s1195_s15, %s935_s26 }
  0x2e   : > { %p932_p2 = pnand %p930_p0, %p1203_p1  ;;  %p938_p6 = scmp.lt.s32.totalorder %s936_s12, %s929_s8 }
  0x30   : > { %p933_p12 = pneg %p932_p2  ;;  %p939_p4 = por %p938_p6, %p937_p11 }
  0x32   : > { %p940_p5 = pnand %p939_p4, %p933_p12 }
  0x34   : > { %943 = shalt.err (!%p940_p5)
}
  0x35   : > { %s1405_s17 = smov 128   ;;  %s1406_s11 = smov 8  }
  0x36   : > { %855 = dma.hbm_to_vmem [thread:$0]  (!%p1179_p13), %s1191_s13, 256, %s1195_s15, %s1197_s16, %s1405_s17, %s1405_s17, %s1406_s11  }
  0x37   : > { %s1235_s25 = scalar_lea.hbm %s1398_s2, %s811_s10  ;;  %s241_s26 = scalar_lea.vmem [#allocation7], %s789_s9 }
  0x38   : > { %s248_s12 = sshll.u32 %s241_s26, 4  ;;  %p795_p6 = scmp.ge.s32.totalorder %s1074_s21, 1  ;;  %s1239_s12 = int_to_ptr.vmem [resolvable:$true] %s248_s12 }
  0x39   : > { %p268_p9 = scmp.lt.s32.totalorder %s1074_s21, 3  ;;  %s787_s1 = sshll.u32 %s1177_s6, 3 }
  0x3a   : > { %s788_s27 = sshll.u32 %s1074_s21, 7  ;;  %s202_s9 = scalar_lea.vmem [#allocation2], %s787_s1 }
  0x3b   : > { %p1245_p11 = pnand %p795_p6, %p268_p9  ;;  %s1252_s14 = scalar_lea.hbm %s1396_s0, %s788_s27 }
  0x3c   : > { %s209_s10 = sshll.u32 %s202_s9, 4  ;;  %s199_s8 = scalar_lea.sflag [#allocation3], %s1177_s6  ;;  %s210_s10 = int_to_ptr.vmem [resolvable:$true] %s209_s10 }
  0x3d   : > { %s1421_s20 = scalar_select %p1245_p11, 1, 0 }
  0x3e   : > { %s944_s26 = scalar_lea.hbm %s1252_s14, 128  ;;  %s949_s24 = scalar_lea.hbm %s1396_s0, 256 }
  0x3f   : > { %p945_p12 = scmp.ne.s32.totalorder %s1252_s14, %s944_s26  ;;  %p950_p8 = scmp.lt.u32.totalorder %s1252_s14, %s1396_s0 }
  0x40   : > { %p951_p10 = scmp.lt.u32.totalorder %s949_s24, %s944_s26  ;;  %p953_p2 = scmp.lt.u32.totalorder %s944_s26, %s1252_s14 }
  0x41   : > { %p947_p3 = pnand %p945_p12, %p1203_p1 }
  0x42   : > { %p952_p0 = por %p951_p10, %p950_p8 }
  0x43   : > { %p948_p7 = pneg %p947_p3 }
  0x44   : > { %p954_p4 = por %p953_p2, %p952_p0 }
  0x46   : > { %p955_p5 = pnand %p954_p4, %p948_p7 }
  0x48   : > { %958 = shalt.err (!%p955_p5)
}
  0x49   : > { %s959_s1 = scalar_lea.vmem %s210_s10, 128  ;;  %s1079_s6 = smov [#allocation2]  }
  0x4a   : > { %p960_p6 = scmp.ne.s32.totalorder %s210_s10, %s959_s1  ;;  %s964_s15 = sshll.u32 %s1079_s6, 4  ;;  %s965_s15 = int_to_ptr.vmem [resolvable:$false] %s964_s15 }
  0x4b   : > { %s966_s17 = scalar_lea.vmem %s965_s15, 256  ;;  %p967_p3 = scmp.lt.s32.totalorder %s210_s10, %s965_s15 }
  0x4c   : > { %p962_p9 = pnand %p960_p6, %p1203_p1  ;;  %p968_p11 = scmp.lt.s32.totalorder %s966_s17, %s959_s1 }
  0x4e   : > { %p963_p12 = pneg %p962_p9  ;;  %p969_p13 = por %p968_p11, %p967_p3 }
  0x50   : > { %p970_p8 = pnand %p969_p13, %p963_p12 }
  0x52   : > { %973 = shalt.err (!%p970_p8)
}
  0x53   : > { %p1422_p10 = scmp.ne.s32.totalorder %s1418_s7, 0  ;;  %s974_s24 = scalar_lea.hbm %s1235_s25, 256 }
  0x54   : > { %p975_p7 = scmp.ne.s32.totalorder %s1235_s25, %s974_s24  ;;  %s979_s26 = scalar_lea.hbm %s1398_s2, 512 }
  0x55   : > { %852 = dma.hbm_to_vmem [thread:$0]  (!%p1422_p10), %s1252_s14, 128, %s210_s10, %s199_s8  }
  0x56   : > { %p977_p0 = pnand %p975_p7, %p1203_p1  ;;  %p980_p13 = scmp.lt.u32.totalorder %s1235_s25, %s1398_s2 }
  0x57   : > { %p981_p11 = scmp.lt.u32.totalorder %s979_s26, %s974_s24  ;;  %p983_p5 = scmp.lt.u32.totalorder %s974_s24, %s1235_s25 }
  0x58   : > { %p978_p2 = pneg %p977_p0 }
  0x59   : > { %p982_p4 = por %p981_p11, %p980_p13 }
  0x5b   : > { %p984_p6 = por %p983_p5, %p982_p4 }
  0x5d   : > { %p985_p9 = pnand %p984_p6, %p978_p2 }
  0x5f   : > { %988 = shalt.err (!%p985_p9)
}
  0x60   : > { %s989_s14 = scalar_lea.vmem %s1239_s12, 256  ;;  %s1080_s10 = smov [#allocation7]  }
  0x61   : > { %p990_p12 = scmp.ne.s32.totalorder %s1239_s12, %s989_s14  ;;  %s994_s8 = sshll.u32 %s1080_s10, 4  ;;  %s995_s8 = int_to_ptr.vmem [resolvable:$false] %s994_s8 }
  0x62   : > { %s996_s1 = scalar_lea.vmem %s995_s8, 512  ;;  %p997_p7 = scmp.lt.s32.totalorder %s1239_s12, %s995_s8 }
  0x63   : > { %p992_p3 = pnand %p990_p12, %p1203_p1  ;;  %p998_p0 = scmp.lt.s32.totalorder %s996_s1, %s989_s14 }
  0x65   : > { %p993_p8 = pneg %p992_p3  ;;  %p999_p13 = por %p998_p0, %p997_p7 }
  0x67   : > { %p1000_p11 = pnand %p999_p13, %p993_p8 }
  0x69   : > { %1003 = shalt.err (!%p1000_p11)
}
  0x6a   : > { %s1423_s6 = smov 8   ;;  %s1424_s15 = smov 128  }
  0x6b   : > { %858 = dma.hbm_to_vmem [thread:$0]  (!%p1422_p10), %s1235_s25, 256, %s1239_s12, %s1197_s16, %s1424_s15, %s1424_s15, %s1423_s6  }
  0x6c   : > { %p1425_p1 = scmp.ne.s32.totalorder %s1421_s20, 0 }
  0x6d   : > { %s1300_s23 = sand.u32 (!%p1425_p1), 1, %s1066_s19   ;;  %p1426_p2 = scmp.ne.s32.totalorder (!%p1425_p1), %s1415_s28, 0 }
  0x6e   : > { %272 = sbr.rel (%p1425_p1) target bundleno = 1032 (0x408), region = 40  ;;  %s796_s17 = sshll.u32 (!%p1425_p1), %s1300_s23, 3 }
  0x6f   : > { %s275_s24 = scalar_lea.sflag (!%p1425_p1), [#allocation3], %s1300_s23  ;;  %s278_s11 = scalar_lea.vmem (!%p1425_p1), [#allocation2], %s796_s17 }
  0x75   : > { %1049 = dma.done.wait (%p1426_p2), %s275_s24, 128  }
  0x76   : > { %1051 = vsyncadd (%p1426_p2), %s275_s24, 4294967168  ;;  %s283_s20 = sand.u32 1, %s1143_s22   ;;  %s797_s7 = sshll.u32 %s1300_s23, 4 }
  0x77   : > { %s284_s16 = scalar_lea.sflag [#allocation6], %s283_s20  ;;  %s287_s25 = scalar_lea.vmem [#allocation5], %s797_s7 }
  0x78   : > { %1053 = dma.done.wait (%p1426_p2), %s284_s16, 512  }
  0x79   : > { %1055 = vsyncadd (%p1426_p2), %s284_s16, 4294966784  ;;  %p339_p10 = scmp.lt.s32.totalorder %s1143_s22, 1  ;;  %v1081_v0 = vmov 0.0|0.0   ;;  %vm1082_vm0 = vmmov 0   ;;  %v1083_v1 = vmov 0.0   ;;  %v1084_v2 = vmov 0  }
  0x7a   : > { %834 = vmatprep.subr.bf16.mxu0 %v1081_v0  ;;  %824 = vmatprep.mubr.msk.f32.mxu0 %vm1082_vm0, %v1083_v1  ;;  %vm352_vm1 = vcmask 261120   ;;  %v346_v3 = vld [vmem:[%s287_s25] sm:$0xff]  ;;  %v347_v4 = vld [vmem:[%s287_s25 + $0x8] sm:$0xff]  ;;  %vm442_vm3 = vcmask 130048   ;;  %s296_s13 = scalar_lea.vmem [#allocation7], %s797_s7  ;;  %v538_v28 = vlaneseq  ;;  %s1087_s8 = smov 32  }
  0x7b   : > { %909 = vset.pattern.permute.xlu0 %v1084_v2  ;;  %s1319_s12 = scalar_select %p339_p10, %s1143_s22, 1  ;;  %838 = vmatprep.subr.bf16.mxu1 %v1081_v0  ;;  %vm836_vm2 = vmpackc.low %vm352_vm1, %vm352_vm1  ;;  %v835_v5 = vpack.c.bf16 %v347_v4, %v346_v3  ;;  %v345_v7 = vld [vmem:[%s278_s11] sm:$0xff]  ;;  %v348_v18 = vld [vmem:[%s296_s13] sm:$0xff]  ;;  %v1085_v26 = vmov 1983009808   ;;  %vm608_vm4 = vcmask 523264  }
  0x7c   : > { %831 = vmatprep.mubr.msk.f32.mxu1 %vm1082_vm0, %v1083_v1  ;;  %v349_v19 = vld [vmem:[%s296_s13 + $0x8] sm:$0xff]  ;;  %v536_v27 = vunpack.c.l.s4 %v1085_v26  ;;  %v1086_v29 = vmov 1934713408   ;;  %v539_v32 = vshrl.u32 %v538_v28, 7  ;;  %s1088_s1 = smov 64   ;;  %s1089_s6 = smov 96  }
  0x7d   : > { %s344_s26 = scalar_lea.vmem %s1400_s4, %s1319_s12  ;;  %837 = vmatpush3.bf16.xpose.msk.msra.mxu0 %vm836_vm2, %v835_v5  ;;  %v839_v20 = vpack.c.bf16 %v349_v19, %v348_v18  ;;  %s341_s10 = scalar_lea.vmem %s1399_s3, %s1319_s12  ;;  %v551_v30 = vunpack.c.l.s4 %v1086_v29  ;;  %v1090_v54 = vmov 1966171168   ;;  %vm610_vm5 = vcmask 785408  }
  0x7e   : > { %v803_v6 = vld [vmem:[%s344_s26] ss:$0 sm:$0xff]  ;;  %v537_v31 = vunpack.c.0.s8 %v536_v27  ;;  %v619_v55 = vunpack.c.l.s4 %v1090_v54  ;;  %s799_s15 = sshll.u32 %s1300_s23, 1  ;;  %s813_s17 = sshll.u32 %s1143_s22, 5  ;;  %vm635_vm6 = vcmp.lt.s32.totalorder %v538_v28, 256 }
  0x7f   : > { %438 = vperm.xlu0 %909, %v803_v6   ;;  %840 = vmatpush3.bf16.msra.mxu1 %v839_v20  ;;  %v804_v23 = vld [vmem:[%s341_s10] ss:$0 sm:$0xff]  ;;  %v552_v33 = vunpack.c.0.s8 %v551_v30  ;;  %s338_s24 = scalar_lea.vmem [#allocation8], %s799_s15  ;;  %s1352_s16 = scalar_lea.hbm %s1401_s5, %s813_s17 }
  0x80   : > { %v540_v34 = vsub.s32 %v537_v31, %v539_v32  ;;  %v620_v57 = vunpack.c.0.s8 %v619_v55  ;;  %s653_s11 = sshll.u32 %s338_s24, 4  ;;  %s639_s25 = scalar_lea.sflag [#allocation4], %s1300_s23  ;;  %s1354_s11 = int_to_ptr.vmem [resolvable:$true] %s653_s11 }
  0x81   : > { %v555_v35 = vsub.s32 %v552_v33, %v539_v32  ;;  %s1004_s12 = scalar_lea.vmem %s1354_s11, 32  ;;  %p1427_p5 = scmp.ne.s32.totalorder %s1416_s29, 0 }
  0x82   : > { %v623_v63 = vsub.s32 %v620_v57, %v539_v32  ;;  %p1005_p4 = scmp.ne.s32.totalorder %s1354_s11, %s1004_s12  ;;  %s1091_s22 = smov [#allocation8]  }
  0x83   : > { %s1008_s28 = sshll.u32 %s1091_s22, 4  ;;  %s1009_s28 = int_to_ptr.vmem [resolvable:$false] %s1008_s28 }
  0x84   : > { %825 = vmatmul.mubr.msk.f32.vlgmr.msra.gmra.mrb[0].mxu0 %vm352_vm1, %v345_v7  ;;  %p1006_p6 = pnand %p1005_p4, %p1427_p5  ;;  %s1010_s9 = scalar_lea.vmem %s1009_s28, 64 }
  0x85   : > { %p1011_p12 = scmp.lt.s32.totalorder %s1354_s11, %s1009_s28  ;;  %p1012_p3 = scmp.lt.s32.totalorder %s1010_s9, %s1004_s12 }
  0x86   : > { %p1007_p9 = pneg %p1006_p6 }
  0x87   : > { %p1013_p8 = por %p1012_p3, %p1011_p12 }
  0x89   : > { %p1014_p7 = pnand %p1013_p8, %p1007_p9 }
  0xfe   : > { %v439_v8 = vpop.permute.xlu0 %438 }
 0x157   : > { %v428_v9 = vpop.f32.mrb[0].mxu0 }
 0x158   : > { %v441_v10 = vmul.f32 %v439_v8, %v428_v9  ;;  %v826_v11 = vpop.f32.mrb[1].mxu0 }
 0x15a   : > { %v443_v12 = vsel %vm442_vm3, %v441_v10, -inf }
 0x15b   : > { %444 = vmax.xlane.f32.xlu0 %v443_v12 }
 0x1e8   : > { %v445_v13 = vpop.xlane.xlu0 %444 }
 0x1e9   : > { %v446_v14 = vsub.f32 %v441_v10, %v445_v13 }
 0x1eb   : > { %v447_v15 = vmul.f32 1.442695, %v446_v14 }
 0x1ed   : > { %910 = vpow2.f32 %v447_v15 }
 0x1f7   : > { %v911_v16 = vpop.eup %910 }
 0x1f8   : > { %v449_v17 = vsel %vm442_vm3, %v911_v16, 0.0 }
 0x1f9   : > { %450 = vadd.xlane.f32.xlu1 %v449_v17 }
 0x286   : > { %v451_v21 = vpop.xlane.xlu1 %450 }
 0x287   : > { %912 = vrcp.f32 %v451_v21 }
 0x291   : > { %v913_v22 = vpop.eup %912 }
 0x292   : > { %v453_v24 = vmul.f32 %v913_v22, %v911_v16 }
 0x294   : > { %v460_v25 = vmul.f32 %v804_v23, %v453_v24 }
 0x296   : > { %832 = vmatmul.mubr.msk.f32.vlgmr.msra.gmra.mrb[0].mxu1 %vm442_vm3, %v460_v25 }
 0x369   : > { %v530_v36 = vpop.f32.mrb[0].mxu1 }
 0x36a   : > { %v534_v37 = vcombine.high %v530_v36, %v1083_v1  ;;  %v541_v38 = vrot.slane %v530_v36, %v540_v34  ;;  %v833_v39 = vpop.f32.mrb[1].mxu1 }
 0x36c   : > { %v548_v40 = vrot.slane %v534_v37, %v540_v34  ;;  %v556_v41 = vrot.slane %v541_v38, %v555_v35  ;;  %v549_v42 = vcombine.high %v541_v38, %v1083_v1 }
 0x36e   : > { %v564_v43 = vcombine.high %v548_v40, %v1083_v1  ;;  %v579_v44 = vcombine.high %v556_v41, %v1083_v1  ;;  %v571_v46 = vrot.slane %v548_v40, %v555_v35  ;;  %v563_v47 = vrot.slane %v549_v42, %v555_v35 }
 0x370   : > { %584 = vrot.lane.b32.xlu1 %v579_v44, %s1087_s8  ;;  %v578_v45 = vrot.slane %v564_v43, %v555_v35  ;;  %v581_v49 = vcombine.high %v571_v46, %v1083_v1  ;;  %v580_v50 = vcombine.high %v563_v47, %v1083_v1 }
 0x372   : > { %v582_v48 = vcombine.high %v578_v45, %v1083_v1 }
 0x374   : > { %588 = vrot.lane.b32.xlu1 %v563_v47, %s1088_s1  ;;  %604 = vrot.lane.b32.xlu0 %v582_v48, %s1089_s6 }
 0x378   : > { %596 = vrot.lane.b32.xlu1 %v581_v49, %s1087_s8 }
 0x37c   : > { %600 = vrot.lane.b32.xlu1 %v578_v45, %s1088_s1 }
 0x380   : > { %592 = vrot.lane.b32.xlu1 %v580_v50, %s1089_s6 }
 0x3e2   : > { %v585_v51 = vpop.permute.xlu1 %584 }
 0x3e3   : > { %v607_v60 = vsel %vm352_vm1, %v556_v41, %v585_v51 }
 0x3e6   : > { %v589_v52 = vpop.permute.xlu1 %588  ;;  %v605_v62 = vpop.permute.xlu0 %604 }
 0x3e7   : > { %v609_v61 = vsel %vm608_vm4, %v607_v60, %v589_v52 }
 0x3ea   : > { %v597_v53 = vpop.permute.xlu1 %596 }
 0x3eb   : > { %v612_v58 = vsel %vm352_vm1, %v571_v46, %v597_v53 }
 0x3ee   : > { %v601_v56 = vpop.permute.xlu1 %600 }
 0x3ef   : > { %v613_v59 = vsel %vm608_vm4, %v612_v58, %v601_v56 }
 0x3f0   : > { %v614_v2 = vsel %vm610_vm5, %v613_v59, %v605_v62 }
 0x3f2   : > { %v593_v0 = vpop.permute.xlu1 %592 }
 0x3f3   : > { %v611_v1 = vsel %vm610_vm5, %v609_v61, %v593_v0 }
 0x3f4   : > { %v617_v3 = vcombine.low %v611_v1, %v614_v2 }
 0x3f6   : > { %v624_v4 = vrot.slane %v617_v3, %v623_v63 }
 0x3f8   : > { %v631_v5 = vrot.slane %v624_v4, %v623_v63 }
 0x3fa   : > { %637 = vst.msk [vmem:[%s338_s24] sm:$0x3] %vm635_vm6, %v631_v5 }
 0x3fb   : > { %1017 = shalt.err (!%p1014_p7)
}
 0x3fc   : > { %s1018_s23 = scalar_lea.hbm %s1352_s16, 32  ;;  %s1022_s27 = scalar_lea.hbm %s1401_s5, 64 }
 0x3fd   : > { %p1019_p0 = scmp.ne.s32.totalorder %s1352_s16, %s1018_s23  ;;  %p1023_p1 = scmp.lt.u32.totalorder %s1352_s16, %s1401_s5 }
 0x3fe   : > { %p1024_p2 = scmp.lt.u32.totalorder %s1022_s27, %s1018_s23  ;;  %p1026_p4 = scmp.lt.u32.totalorder %s1018_s23, %s1352_s16 }
 0x3ff   : > { %p1020_p13 = pnand %p1019_p0, %p1427_p5 }
 0x400   : > { %p1025_p10 = por %p1024_p2, %p1023_p1 }
 0x401   : > { %p1021_p11 = pneg %p1020_p13 }
 0x402   : > { %p1027_p6 = por %p1026_p4, %p1025_p10 }
 0x404   : > { %p1028_p9 = pnand %p1027_p6, %p1021_p11 }
 0x406   : > { %1031 = shalt.err (!%p1028_p9)
}
 0x407   : > { %847 = dma.vmem_to_hbm [thread:$0]  (%p1427_p5), %s1354_s11, 32, %s1352_s16, %s639_s25  }
 0x408 PF: > { %s665_s8 = sand.u32 1, %s1062_s18   ;;  %p1428_p12 = scmp.ne.s32.totalorder %s1417_s30, 0 }
 0x409   : > { %p1429_p3 = scmp.ge.s32.totalorder %s1074_s21, 2  ;;  %s666_s1 = scalar_lea.sflag [#allocation4], %s665_s8 }
 0x40b   : > { %p860_p8 = pnand %p1429_p3, %p1428_p12 }
 0x40d   : > { %1057 = dma.done.wait (!%p860_p8), %s666_s1, 32  }
 0x40e   : > { %1059 = vsyncadd (!%p860_p8), %s666_s1, 4294967264  ;;  %s1430_s21 = sld [smem:[#allocation13_spill]]  ;;  %s1431_s6 = sld [smem:[#allocation12_spill]] }
 0x40f   : > { %s1432_s20 = sld [smem:[#allocation14_spill]]  ;;  %s1433_s18 = smov %s1066_s19 }
 0x414   : > { %p21_p7 = scmp.ge.s32.totalorder %s1430_s21, 4   ;;  %s1434_s19 = smov %s1431_s6 }
 0x416   :  { %23 = sbr.rel (!%p21_p7) target bundleno = 9 (0x9), region = 115 }
 0x41d   :  { %671 = vsyncpa [#allocation3], 1 }
 0x41e   :  { %673 = vsyncpa [#allocation3 + $0x1], 1 }
 0x41f   :  { %674 = vsyncpa [#allocation6], 1 }
 0x420   :  { %676 = vsyncpa [#allocation6 + $0x1], 1 }
 0x421   :  { %677 = vsyncpa [#allocation4], 1 }
 0x422   :  { %679 = vsyncpa [#allocation4 + $0x1], 1 }

</bundles_post_ra>
